<compile_context>
chip_gen: v7x
topology: tpu7x:2x2x1
jax: 0.10.0
libtpu: 0.0.40
codegen_flags: <defaults>
</compile_context>

<pallas_src>
import jax
import jax.numpy as jnp
from jax.experimental import pallas as pl
from jax.experimental.pallas import tpu as pltpu


def _h_swish_kernel(x_ref, o_ref):
    # Upcast to f32 internally (free in a memory-bound kernel).
    x = x_ref[...].astype(jnp.float32)
    # x * ReLU6(x + 3) / 6
    y = x * (jnp.clip(x + 3.0, 0.0, 6.0) / 6.0)
    o_ref[...] = y.astype(o_ref.dtype)


def _sublane_multiple(dtype) -> int:
    return {4: 8, 2: 16, 1: 32}.get(jnp.dtype(dtype).itemsize, 8)


def _round_up(a: int, b: int) -> int:
    return ((a + b - 1) // b) * b


def _target_block_bytes() -> int:
    # Generation-aware block size: bigger blocks on v7x to amortize per-step
    # overhead against 3.2 TB/s HBM; 4 MiB elsewhere (v6e is already ~roofline).
    try:
        kind = jax.devices()[0].device_kind.lower()
    except Exception:
        kind = ""
    if "v7" in kind or "7x" in kind:
        return 8 * 1024 * 1024
    return 4 * 1024 * 1024


def _h_swish_2d(x2d: jax.Array) -> jax.Array:
    """Pallas hard-swish on a lane-dense (rows, cols) slab (cols % 128 == 0)."""
    rows, cols = x2d.shape
    dtype = x2d.dtype
    itemsize = jnp.dtype(dtype).itemsize
    sublane = _sublane_multiple(dtype)

    target_bytes = _target_block_bytes()
    tile_r = max(sublane, target_bytes // (cols * itemsize))
    tile_r = (tile_r // sublane) * sublane  # dtype-aware sublane alignment

    # v7x has 2 TensorCores; keep at least 2 grid steps whenever rows permit so
    # dimension_semantics=("parallel",) can shard the grid across cores.
    if rows >= 2 * sublane:
        tile_r = min(tile_r, _round_up(pl.cdiv(rows, 2), sublane))
    if tile_r >= rows:
        tile_r = rows  # full-extent block is always layout-legal

    grid = (pl.cdiv(rows, tile_r),)
    n = rows * cols

    return pl.pallas_call(
        _h_swish_kernel,
        out_shape=jax.ShapeDtypeStruct((rows, cols), dtype),
        grid_spec=pltpu.PrefetchScalarGridSpec(
            num_scalar_prefetch=0,
            grid=grid,
            in_specs=[pl.BlockSpec((tile_r, cols), lambda i: (i, 0))],
            out_specs=pl.BlockSpec((tile_r, cols), lambda i: (i, 0)),
        ),
        compiler_params=pltpu.CompilerParams(
            dimension_semantics=("parallel",),
            # Covers in+out double-buffered blocks with headroom; well inside
            # physical VMEM on every generation (64 MiB v7x, 128 MiB v5e/v6e).
            vmem_limit_bytes=4 * target_bytes + 8 * 1024 * 1024,
        ),
        cost_estimate=pl.CostEstimate(
            flops=4 * n,
            transcendentals=0,
            bytes_accessed=2 * n * itemsize,
        ),
    )(x2d)


def _h_swish_jnp(x: jax.Array) -> jax.Array:
    x32 = x.astype(jnp.float32)
    return (x32 * (jnp.clip(x32 + 3.0, 0.0, 6.0) / 6.0)).astype(x.dtype)


def h_swish(x: jax.Array) -> jax.Array:
    """Elementwise hard-swish matching torch: x * ReLU6(x + 3) / 6. Any shape."""
    orig_shape = x.shape
    n = x.size
    if n == 0:
        return x
    flat = x.reshape(-1)  # contiguous reshape: free (no HBM pass)

    # Largest lane-multiple column count that divides n exactly -> zero padding,
    # zero extra copies.
    for cols in (512, 256, 128):
        if n % cols == 0:
            out2d = _h_swish_2d(flat.reshape(n // cols, cols))
            return out2d.reshape(orig_shape)

    # Ragged element count: kernel on the aligned prefix, tiny tail in plain jnp.
    cols = 128
    n_main = (n // cols) * cols
    if n_main == 0:
        return _h_swish_jnp(x)  # tiny tensor: not worth a kernel launch
    main = _h_swish_2d(flat[:n_main].reshape(n_main // cols, cols)).reshape(-1)
    tail = _h_swish_jnp(flat[n_main:])
    return jnp.concatenate([main, tail]).reshape(orig_shape)


def h_swish_ref(x: jax.Array) -> jax.Array:
    return x * (jnp.clip(x + 3.0, 0.0, 6.0) / 6.0)


if __name__ == "__main__":
    key = jax.random.PRNGKey(0)

    # NCHW, consistent with the PyTorch conv-style inputs this module sees.
    x = jax.random.normal(key, (2, 4, 16, 16), dtype=jnp.float32) * 4.0
    out = jax.block_until_ready(h_swish(x))
    ref = h_swish_ref(x)
    assert out.shape == x.shape
    assert out.dtype == x.dtype
    assert jnp.allclose(out, ref, atol=1e-6, rtol=1e-6), "mismatch vs reference (f32)"

    # Ragged element count (n % 128 != 0) -> prefix-kernel + jnp-tail path.
    k2 = jax.random.PRNGKey(1)
    x2 = jax.random.normal(k2, (3, 5, 7, 11), dtype=jnp.float32) * 4.0
    out2 = jax.block_until_ready(h_swish(x2))
    ref2 = h_swish_ref(x2)
    assert out2.shape == x2.shape
    assert jnp.allclose(out2, ref2, atol=1e-6, rtol=1e-6), "mismatch vs reference (ragged)"

    # bf16 path (dtype-aware sublane multiple, f32 internal compute).
    x3 = (jax.random.normal(jax.random.PRNGKey(2), (2, 8, 16, 16), dtype=jnp.float32)
          * 4.0).astype(jnp.bfloat16)
    out3 = jax.block_until_ready(h_swish(x3))
    ref3 = h_swish_ref(x3.astype(jnp.float32))
    assert out3.dtype == jnp.bfloat16
    assert jnp.allclose(out3.astype(jnp.float32), ref3, atol=3e-2, rtol=3e-2), \
        "mismatch vs reference (bf16)"

    # Medium tensor: exercises the multi-step "parallel" grid path.
    x4 = jax.random.normal(jax.random.PRNGKey(3), (2, 32, 64, 64), dtype=jnp.float32) * 4.0
    out4 = jax.block_until_ready(h_swish(x4))
    ref4 = h_swish_ref(x4)
    assert jnp.allclose(out4, ref4, atol=1e-6, rtol=1e-6), "mismatch vs reference (multi-step)"

    print("KERNEL_OK")
</pallas_src>

<mosaic_0001>
module attributes {stable_mosaic.version = 11 : i64} {
  func.func @_h_swish_kernel(%arg0: i32, %arg1: memref<4x512xf32, #tpu.memory_space<vmem>>, %arg2: memref<4x512xf32, #tpu.memory_space<vmem>>) attributes {dimension_semantics = [#tpu.dimension_semantics<parallel>], iteration_bounds = array<i64: 1>, scalar_prefetch = 0 : i64, scratch_operands = 0 : i64, tpu.core_type = #tpu.core_type<tc>, window_params = [{transform_indices = @transform_0, window_bounds = array<i64: 4, 512>}, {transform_indices = @transform_1, window_bounds = array<i64: 4, 512>}]} {
    %c0 = arith.constant 0 : index
    %c0_0 = arith.constant 0 : index
    %0 = vector.load %arg1[%c0, %c0_0] : memref<4x512xf32, #tpu.memory_space<vmem>>, vector<4x512xf32>
    %cst = arith.constant 3.000000e+00 : f32
    %1 = vector.broadcast %cst : f32 to vector<4x512xf32>
    %2 = arith.addf %0, %1 : vector<4x512xf32>
    %cst_1 = arith.constant 0.000000e+00 : f32
    %cst_2 = arith.constant 6.000000e+00 : f32
    %3 = vector.broadcast %cst_1 : f32 to vector<4x512xf32>
    %4 = arith.maximumf %3, %2 : vector<4x512xf32>
    %5 = vector.broadcast %cst_2 : f32 to vector<4x512xf32>
    %6 = arith.minimumf %5, %4 : vector<4x512xf32>
    %cst_3 = arith.constant 6.000000e+00 : f32
    %7 = vector.broadcast %cst_3 : f32 to vector<4x512xf32>
    %8 = arith.divf %6, %7 : vector<4x512xf32>
    %9 = arith.mulf %0, %8 : vector<4x512xf32>
    %c0_4 = arith.constant 0 : index
    %c0_5 = arith.constant 0 : index
    %10 = vector.load %arg2[%c0_4, %c0_5] : memref<4x512xf32, #tpu.memory_space<vmem>>, vector<4x512xf32>
    tpu.vector_store %arg2[%c0_4, %c0_5], %9 {strides = array<i32>} : memref<4x512xf32, #tpu.memory_space<vmem>>, vector<4x512xf32>,
    return
  }
  func.func @transform_0(%arg0: i32) -> (i32, i32) {
    %c0_i32 = arith.constant 0 : i32
    %c0_i32_0 = arith.constant 0 : i32
    return %arg0, %c0_i32 : i32, i32
  }
  func.func @transform_1(%arg0: i32) -> (i32, i32) {
    %c0_i32 = arith.constant 0 : i32
    %c0_i32_0 = arith.constant 0 : i32
    return %arg0, %c0_i32 : i32, i32
  }
}

</mosaic_0001>

<bundles_post_ra>
// kernel: tpu_custom_call.1
= control target key start
LH: loop header
LB: loop body
LE: loop exit
PB: predicated region body
PF: predicated region fallthrough
CT: control target
= control target key end

     0   :  { %6 = vsyncpa [#allocation3], 0  ;;  %s137_s0 = inlined_call_operand.hbm [shape: f32[4,512], index: 0, kind: input, shape index: {}]   ;;  %s138_s1 = inlined_call_operand.hbm [shape: f32[4,512], index: 1, kind: output, shape index: {}]  }
   0x1   :  { %7 = vsyncpa [#allocation4], 0  ;;  %s101_s6 = smov [#allocation2]   ;;  %s53_s10 = scalar_lea.hbm %s137_s0, 256 }
   0x2   :  { %s14_s7 = sshll.u32 %s101_s6, 4  ;;  %p54_p0 = scmp.ne.s32.totalorder %s137_s0, %s53_s10  ;;  %s15_s7 = int_to_ptr.vmem [resolvable:$true] %s14_s7 }
   0x3   :  { %p57_p1 = scmp.lt.u32.totalorder %s53_s10, %s137_s0 }
   0x5   :  { %p59_p2 = pnand %p57_p1, %p54_p0 }
   0x7   :  { %62 = shalt.err (!%p59_p2)
}
   0x8   :  { %s63_s15 = scalar_lea.vmem %s15_s7, 256  ;;  %p68_p4 = scmp.lt.s32.totalorder %s15_s7, %s15_s7 }
   0x9   :  { %p64_p3 = scmp.ne.s32.totalorder %s15_s7, %s63_s15  ;;  %p69_p5 = scmp.lt.s32.totalorder %s63_s15, %s63_s15 }
   0xb   :  { %p70_p6 = por %p69_p5, %p68_p4 }
   0xd   :  { %p71_p7 = pnand %p70_p6, %p64_p3 }
   0xf   :  { %74 = shalt.err (!%p71_p7)
}
  0x10   :  { %17 = dma.hbm_to_vmem [thread:$0]  %s137_s0, 256, %s15_s7, [#allocation3]  }
  0x11   :  { %97 = dma.done.wait [#allocation3], 256  }
  0x12   :  { %98 = vsyncadd [#allocation3], 4294967040  ;;  %v21_v0 = vld [vmem:[#allocation2] sm:$0xff]  ;;  %v22_v1 = vld [vmem:[#allocation2 + $0x8] sm:$0xff]  ;;  %s102_s18 = smov [#allocation5]  }
  0x13   :  { %v23_v2 = vadd.f32 3.0, %v21_v0  ;;  %v24_v3 = vadd.f32 3.0, %v22_v1  ;;  %s42_s19 = sshll.u32 %s102_s18, 4  ;;  %s43_s19 = int_to_ptr.vmem [resolvable:$true] %s42_s19 }
  0x14   :  { %s75_s0 = scalar_lea.vmem %s43_s19, 256  ;;  %p80_p9 = scmp.lt.s32.totalorder %s43_s19, %s43_s19 }
  0x15   :  { %v25_v4 = vmax.f32 %v23_v2, 0.0  ;;  %v26_v5 = vmax.f32 %v24_v3, 0.0  ;;  %p76_p8 = scmp.ne.s32.totalorder %s43_s19, %s75_s0  ;;  %p81_p10 = scmp.lt.s32.totalorder %s75_s0, %s75_s0 }
  0x17   :  { %v27_v6 = vmin.f32 %v25_v4, 6.0  ;;  %v28_v7 = vmin.f32 %v26_v5, 6.0  ;;  %p82_p11 = por %p81_p10, %p80_p9 }
  0x19   :  { %v30_v8 = vmul.f32 0.16666667, %v27_v6  ;;  %v31_v9 = vmul.f32 0.16666667, %v28_v7  ;;  %p83_p12 = pnand %p82_p11, %p76_p8 }
  0x1b   :  { %v32_v10 = vmul.f32 %v30_v8, %v21_v0  ;;  %v33_v11 = vmul.f32 %v31_v9, %v22_v1 }
  0x1d   :  { %34 = vst [vmem:[#allocation5] sm:$0xff] %v32_v10  ;;  %35 = vst [vmem:[#allocation5 + $0x8] sm:$0xff] %v33_v11 }
  0x1e   :  { %86 = shalt.err (!%p83_p12)
}
  0x1f   :  { %s87_s22 = scalar_lea.hbm %s138_s1, 256 }
  0x20   :  { %p88_p13 = scmp.ne.s32.totalorder %s138_s1, %s87_s22  ;;  %p91_p0 = scmp.lt.u32.totalorder %s87_s22, %s138_s1 }
  0x22   :  { %p93_p1 = pnand %p91_p0, %p88_p13 }
  0x24   :  { %96 = shalt.err (!%p93_p1)
}
  0x25   :  { %45 = dma.vmem_to_hbm [thread:$0]  %s43_s19, 256, %s138_s1, [#allocation4]  }
  0x26   :  { %99 = dma.done.wait [#allocation4], 256  }
  0x27   :  { %100 = vsyncadd [#allocation4], 4294967040 }
  0x28   :  { %49 = vsyncpa [#allocation3], 1 }
  0x29   :  { %50 = vsyncpa [#allocation4], 1 }

</bundles_post_ra>
